<compile_context>
chip_gen: v7x
topology: tpu7x:2x2x1
jax: 0.10.0
libtpu: 0.0.40
codegen_flags: <defaults>
</compile_context>

<pallas_src>
import functools

import jax
import jax.numpy as jnp
from jax.experimental import pallas as pl
from jax.experimental.pallas import tpu as pltpu


def basenn_kernel(x_ref, w1_ref, b1_ref, w2_ref, b2_ref, w3_ref, b3_ref,
                  wh_ref, bh_ref, out_ref, *, out_dim):
    cdt = w1_ref.dtype  # MXU operand dtype (f32 or bf16); accumulation is f32.
    x = x_ref[...].astype(cdt)
    h = jnp.maximum(
        jnp.dot(x, w1_ref[...], preferred_element_type=jnp.float32) + b1_ref[...], 0.0)
    h = jnp.maximum(
        jnp.dot(h.astype(cdt), w2_ref[...], preferred_element_type=jnp.float32) + b2_ref[...], 0.0)
    h = jnp.maximum(
        jnp.dot(h.astype(cdt), w3_ref[...], preferred_element_type=jnp.float32) + b3_ref[...], 0.0)
    # Fused mu|log_var head: one MXU push, then exp only on the var lanes.
    y = jnp.dot(h.astype(cdt), wh_ref[...], preferred_element_type=jnp.float32) + bh_ref[...]
    col = jax.lax.broadcasted_iota(jnp.int32, y.shape, 1)
    y = jnp.where(col >= out_dim, jnp.exp(y), y)  # cols [out_dim, 2*out_dim) = var
    out_ref[...] = y.astype(out_ref.dtype)


def basenn_forward(x, params, *, tm=256, compute_dtype=jnp.bfloat16):
    (w1, b1, w2, b2, w3, b3, wmu, bmu, wvar, bvar) = params
    B, in_dim = x.shape
    H = w1.shape[1]
    out_dim = wmu.shape[1]
    head = 2 * out_dim
    # Pad the fused head to a lane-dense width (multiple of 128) so the output
    # store is an unmasked vst; slice the real (B, 2*out_dim) slab outside.
    head_pad = max(128, pl.cdiv(head, 128) * 128)
    wh = (jnp.zeros((H, head_pad), jnp.float32)
          .at[:, :out_dim].set(wmu)
          .at[:, out_dim:head].set(wvar))
    bh = (jnp.zeros((1, head_pad), jnp.float32)
          .at[:, :out_dim].set(bmu)
          .at[:, out_dim:head].set(bvar))

    cdt = jnp.dtype(compute_dtype)
    w1c, w2c, w3c, whc = (w.astype(cdt) for w in (w1, w2, w3, wh))

    TM = min(tm, B)                      # MXU-sized batch tile (256 on v6e/v7x)
    grid = (pl.cdiv(B, TM),)

    def resident(shape):                 # weights/biases: same block every step
        return pl.BlockSpec(shape, lambda i: (0, 0))

    itemsize = jnp.dtype(cdt).itemsize
    flops = 2 * B * (in_dim * H + 2 * H * H + H * head_pad)
    bytes_accessed = (
        B * in_dim * 4
        + (in_dim * H + 2 * H * H + H * head_pad) * itemsize
        + (3 * H + head_pad) * 4
        + B * head_pad * 4)

    out = pl.pallas_call(
        functools.partial(basenn_kernel, out_dim=out_dim),
        out_shape=jax.ShapeDtypeStruct((B, head_pad), jnp.float32),
        grid=grid,
        in_specs=[
            pl.BlockSpec((TM, in_dim), lambda i: (i, 0)),   # x: batch-tiled
            resident((in_dim, H)), resident((1, H)),        # fc1
            resident((H, H)), resident((1, H)),             # fc2
            resident((H, H)), resident((1, H)),             # fc3
            resident((H, head_pad)), resident((1, head_pad)),  # fused head
        ],
        out_specs=pl.BlockSpec((TM, head_pad), lambda i: (i, 0)),
        compiler_params=pltpu.CompilerParams(
            dimension_semantics=("parallel",)),             # v7x: 2 TCs on batch
        cost_estimate=pl.CostEstimate(
            flops=flops, transcendentals=B * head_pad,
            bytes_accessed=bytes_accessed),
    )(x, w1c, b1, w2c, b2, w3c, b3, whc, bh)
    return out[:, :head]


def init_params(key, input_dim, hidden_dim, output_dim):
    """Deterministic synthetic init; weights stored as (in, out)."""
    def linear(k, d_in, d_out):
        k1, k2 = jax.random.split(k)
        bound = 1.0 / jnp.sqrt(d_in)
        w = jax.random.uniform(k1, (d_in, d_out), jnp.float32, -bound, bound)
        b = jax.random.uniform(k2, (1, d_out), jnp.float32, -bound, bound)
        return w, b

    keys = jax.random.split(key, 5)
    w1, b1 = linear(keys[0], input_dim, hidden_dim)
    w2, b2 = linear(keys[1], hidden_dim, hidden_dim)
    w3, b3 = linear(keys[2], hidden_dim, hidden_dim)
    wmu, bmu = linear(keys[3], hidden_dim, output_dim)
    wvar, bvar = linear(keys[4], hidden_dim, output_dim)
    return (w1, b1, w2, b2, w3, b3, wmu, bmu, wvar, bvar)


def basenn_reference(x, params, compute_dtype=jnp.float32):
    """Pure-JAX reference; casts dot operands the same way the kernel does."""
    (w1, b1, w2, b2, w3, b3, wmu, bmu, wvar, bvar) = params
    cdt = jnp.dtype(compute_dtype)

    def dot(a, w):
        return jnp.dot(a.astype(cdt), w.astype(cdt),
                       preferred_element_type=jnp.float32)

    h = jnp.maximum(dot(x, w1) + b1, 0.0)
    h = jnp.maximum(dot(h, w2) + b2, 0.0)
    h = jnp.maximum(dot(h, w3) + b3, 0.0)
    mu = dot(h, wmu) + bmu
    var = jnp.exp(dot(h, wvar) + bvar)
    return jnp.concatenate([mu, var], axis=-1)


if __name__ == "__main__":
    # Small shapes consistent with the module's forward:
    # batch=8, input_dim=16, hidden_dim=128, output_dim=8 -> output (8, 16)
    batch, input_dim, hidden_dim, output_dim = 8, 16, 128, 8

    key = jax.random.PRNGKey(0)
    kx, kp = jax.random.split(key)
    x = jax.random.normal(kx, (batch, input_dim), jnp.float32)
    params = init_params(kp, input_dim, hidden_dim, output_dim)

    # 1) f32 MXU operands: exact match against the f32 reference.
    out_f32 = jax.block_until_ready(
        basenn_forward(x, params, compute_dtype=jnp.float32))
    ref_f32 = basenn_reference(x, params, jnp.float32)
    assert out_f32.shape == (batch, 2 * output_dim)
    assert jnp.allclose(out_f32, ref_f32, atol=1e-4, rtol=1e-4)

    # 2) bf16 MXU operands (native on v5e/v6e/v7x), f32 accumulation:
    #    compare against a matched-precision reference.
    out_bf16 = jax.block_until_ready(
        basenn_forward(x, params, compute_dtype=jnp.bfloat16))
    ref_bf16 = basenn_reference(x, params, jnp.bfloat16)
    assert jnp.allclose(out_bf16, ref_bf16, atol=1e-3, rtol=1e-3)

    # 3) Larger batch to exercise the batch grid / resident-weight pipelining.
    xb = jax.random.normal(jax.random.PRNGKey(1), (512, input_dim), jnp.float32)
    out_big = jax.block_until_ready(
        basenn_forward(xb, params, compute_dtype=jnp.bfloat16))
    ref_big = basenn_reference(xb, params, jnp.bfloat16)
    assert out_big.shape == (512, 2 * output_dim)
    assert jnp.allclose(out_big, ref_big, atol=1e-3, rtol=1e-3)

    print("KERNEL_OK")
</pallas_src>

<mosaic_0001>
module attributes {stable_mosaic.version = 11 : i64} {
  func.func @basenn_kernel(%arg0: i32, %arg1: memref<8x16xf32, #tpu.memory_space<vmem>>, %arg2: memref<16x128xf32, #tpu.memory_space<vmem>>, %arg3: memref<1x128xf32, #tpu.memory_space<vmem>>, %arg4: memref<128x128xf32, #tpu.memory_space<vmem>>, %arg5: memref<1x128xf32, #tpu.memory_space<vmem>>, %arg6: memref<128x128xf32, #tpu.memory_space<vmem>>, %arg7: memref<1x128xf32, #tpu.memory_space<vmem>>, %arg8: memref<128x128xf32, #tpu.memory_space<vmem>>, %arg9: memref<1x128xf32, #tpu.memory_space<vmem>>, %arg10: memref<8x128xf32, #tpu.memory_space<vmem>>) attributes {dimension_semantics = [#tpu.dimension_semantics<parallel>], iteration_bounds = array<i64: 1>, scalar_prefetch = 0 : i64, scratch_operands = 0 : i64, tpu.core_type = #tpu.core_type<tc>, window_params = [{transform_indices = @transform_0, window_bounds = array<i64: 8, 16>}, {pipeline_mode = #tpu.pipeline_mode<synchronous>, transform_indices = @transform_1, window_bounds = array<i64: 16, 128>}, {pipeline_mode = #tpu.pipeline_mode<synchronous>, transform_indices = @transform_2, window_bounds = array<i64: 1, 128>}, {pipeline_mode = #tpu.pipeline_mode<synchronous>, transform_indices = @transform_3, window_bounds = array<i64: 128, 128>}, {pipeline_mode = #tpu.pipeline_mode<synchronous>, transform_indices = @transform_4, window_bounds = array<i64: 1, 128>}, {pipeline_mode = #tpu.pipeline_mode<synchronous>, transform_indices = @transform_5, window_bounds = array<i64: 128, 128>}, {pipeline_mode = #tpu.pipeline_mode<synchronous>, transform_indices = @transform_6, window_bounds = array<i64: 1, 128>}, {pipeline_mode = #tpu.pipeline_mode<synchronous>, transform_indices = @transform_7, window_bounds = array<i64: 128, 128>}, {pipeline_mode = #tpu.pipeline_mode<synchronous>, transform_indices = @transform_8, window_bounds = array<i64: 1, 128>}, {transform_indices = @transform_9, window_bounds = array<i64: 8, 128>}]} {
    %c0 = arith.constant 0 : index
    %c0_0 = arith.constant 0 : index
    %0 = vector.load %arg1[%c0, %c0_0] : memref<8x16xf32, #tpu.memory_space<vmem>>, vector<8x16xf32>
    %c0_1 = arith.constant 0 : index
    %c0_2 = arith.constant 0 : index
    %1 = vector.load %arg2[%c0_1, %c0_2] : memref<16x128xf32, #tpu.memory_space<vmem>>, vector<16x128xf32>
    %cst = arith.constant dense<0.000000e+00> : vector<8x128xf32>
    %2 = tpu.matmul %0, %1, %cst {dimension_numbers = #tpu.dot_dimension_numbers<[1], [0], [0], [1], [0, 0, 1, 1], [], []>} : vector<8x16xf32>, vector<16x128xf32>, vector<8x128xf32> -> vector<8x128xf32>
    %c0_3 = arith.constant 0 : index
    %c0_4 = arith.constant 0 : index
    %3 = vector.load %arg3[%c0_3, %c0_4] : memref<1x128xf32, #tpu.memory_space<vmem>>, vector<1x128xf32>
    %4 = vector.broadcast %3 : vector<1x128xf32> to vector<8x128xf32>
    %5 = arith.addf %2, %4 : vector<8x128xf32>
    %cst_5 = arith.constant 0.000000e+00 : f32
    %6 = vector.broadcast %cst_5 : f32 to vector<8x128xf32>
    %7 = arith.maximumf %5, %6 : vector<8x128xf32>
    %c0_6 = arith.constant 0 : index
    %c0_7 = arith.constant 0 : index
    %8 = vector.load %arg4[%c0_6, %c0_7] : memref<128x128xf32, #tpu.memory_space<vmem>>, vector<128x128xf32>
    %cst_8 = arith.constant dense<0.000000e+00> : vector<8x128xf32>
    %9 = tpu.matmul %7, %8, %cst_8 {dimension_numbers = #tpu.dot_dimension_numbers<[1], [0], [0], [1], [0, 0, 1, 1], [], []>} : vector<8x128xf32>, vector<128x128xf32>, vector<8x128xf32> -> vector<8x128xf32>
    %c0_9 = arith.constant 0 : index
    %c0_10 = arith.constant 0 : index
    %10 = vector.load %arg5[%c0_9, %c0_10] : memref<1x128xf32, #tpu.memory_space<vmem>>, vector<1x128xf32>
    %11 = vector.broadcast %10 : vector<1x128xf32> to vector<8x128xf32>
    %12 = arith.addf %9, %11 : vector<8x128xf32>
    %cst_11 = arith.constant 0.000000e+00 : f32
    %13 = vector.broadcast %cst_11 : f32 to vector<8x128xf32>
    %14 = arith.maximumf %12, %13 : vector<8x128xf32>
    %c0_12 = arith.constant 0 : index
    %c0_13 = arith.constant 0 : index
    %15 = vector.load %arg6[%c0_12, %c0_13] : memref<128x128xf32, #tpu.memory_space<vmem>>, vector<128x128xf32>
    %cst_14 = arith.constant dense<0.000000e+00> : vector<8x128xf32>
    %16 = tpu.matmul %14, %15, %cst_14 {dimension_numbers = #tpu.dot_dimension_numbers<[1], [0], [0], [1], [0, 0, 1, 1], [], []>} : vector<8x128xf32>, vector<128x128xf32>, vector<8x128xf32> -> vector<8x128xf32>
    %c0_15 = arith.constant 0 : index
    %c0_16 = arith.constant 0 : index
    %17 = vector.load %arg7[%c0_15, %c0_16] : memref<1x128xf32, #tpu.memory_space<vmem>>, vector<1x128xf32>
    %18 = vector.broadcast %17 : vector<1x128xf32> to vector<8x128xf32>
    %19 = arith.addf %16, %18 : vector<8x128xf32>
    %cst_17 = arith.constant 0.000000e+00 : f32
    %20 = vector.broadcast %cst_17 : f32 to vector<8x128xf32>
    %21 = arith.maximumf %19, %20 : vector<8x128xf32>
    %c0_18 = arith.constant 0 : index
    %c0_19 = arith.constant 0 : index
    %22 = vector.load %arg8[%c0_18, %c0_19] : memref<128x128xf32, #tpu.memory_space<vmem>>, vector<128x128xf32>
    %cst_20 = arith.constant dense<0.000000e+00> : vector<8x128xf32>
    %23 = tpu.matmul %21, %22, %cst_20 {dimension_numbers = #tpu.dot_dimension_numbers<[1], [0], [0], [1], [0, 0, 1, 1], [], []>} : vector<8x128xf32>, vector<128x128xf32>, vector<8x128xf32> -> vector<8x128xf32>
    %c0_21 = arith.constant 0 : index
    %c0_22 = arith.constant 0 : index
    %24 = vector.load %arg9[%c0_21, %c0_22] : memref<1x128xf32, #tpu.memory_space<vmem>>, vector<1x128xf32>
    %25 = vector.broadcast %24 : vector<1x128xf32> to vector<8x128xf32>
    %26 = arith.addf %23, %25 : vector<8x128xf32>
    %27 = tpu.iota {dimensions = array<i32: 1>} : vector<8x128xi32>
    %c8_i32 = arith.constant 8 : i32
    %28 = vector.broadcast %c8_i32 : i32 to vector<8x128xi32>
    %29 = arith.cmpi sge, %27, %28 : vector<8x128xi32>
    %30 = math.exp %26 : vector<8x128xf32>
    %31 = arith.select %29, %30, %26 : vector<8x128xi1>, vector<8x128xf32>
    %c0_23 = arith.constant 0 : index
    %c0_24 = arith.constant 0 : index
    %32 = vector.load %arg10[%c0_23, %c0_24] : memref<8x128xf32, #tpu.memory_space<vmem>>, vector<8x128xf32>
    tpu.vector_store %arg10[%c0_23, %c0_24], %31 {strides = array<i32>} : memref<8x128xf32, #tpu.memory_space<vmem>>, vector<8x128xf32>,
    return
  }
  func.func @transform_0(%arg0: i32) -> (i32, i32) {
    %c0_i32 = arith.constant 0 : i32
    %c0_i32_0 = arith.constant 0 : i32
    return %arg0, %c0_i32 : i32, i32
  }
  func.func @transform_1(%arg0: i32) -> (i32, i32) {
    %c0_i32 = arith.constant 0 : i32
    %c0_i32_0 = arith.constant 0 : i32
    %c0_i32_1 = arith.constant 0 : i32
    return %c0_i32, %c0_i32_0 : i32, i32
  }
  func.func @transform_2(%arg0: i32) -> (i32, i32) {
    %c0_i32 = arith.constant 0 : i32
    %c0_i32_0 = arith.constant 0 : i32
    %c0_i32_1 = arith.constant 0 : i32
    return %c0_i32, %c0_i32_0 : i32, i32
  }
  func.func @transform_3(%arg0: i32) -> (i32, i32) {
    %c0_i32 = arith.constant 0 : i32
    %c0_i32_0 = arith.constant 0 : i32
    %c0_i32_1 = arith.constant 0 : i32
    return %c0_i32, %c0_i32_0 : i32, i32
  }
  func.func @transform_4(%arg0: i32) -> (i32, i32) {
    %c0_i32 = arith.constant 0 : i32
    %c0_i32_0 = arith.constant 0 : i32
    %c0_i32_1 = arith.constant 0 : i32
    return %c0_i32, %c0_i32_0 : i32, i32
  }
  func.func @transform_5(%arg0: i32) -> (i32, i32) {
    %c0_i32 = arith.constant 0 : i32
    %c0_i32_0 = arith.constant 0 : i32
    %c0_i32_1 = arith.constant 0 : i32
    return %c0_i32, %c0_i32_0 : i32, i32
  }
  func.func @transform_6(%arg0: i32) -> (i32, i32) {
    %c0_i32 = arith.constant 0 : i32
    %c0_i32_0 = arith.constant 0 : i32
    %c0_i32_1 = arith.constant 0 : i32
    return %c0_i32, %c0_i32_0 : i32, i32
  }
  func.func @transform_7(%arg0: i32) -> (i32, i32) {
    %c0_i32 = arith.constant 0 : i32
    %c0_i32_0 = arith.constant 0 : i32
    %c0_i32_1 = arith.constant 0 : i32
    return %c0_i32, %c0_i32_0 : i32, i32
  }
  func.func @transform_8(%arg0: i32) -> (i32, i32) {
    %c0_i32 = arith.constant 0 : i32
    %c0_i32_0 = arith.constant 0 : i32
    %c0_i32_1 = arith.constant 0 : i32
    return %c0_i32, %c0_i32_0 : i32, i32
  }
  func.func @transform_9(%arg0: i32) -> (i32, i32) {
    %c0_i32 = arith.constant 0 : i32
    %c0_i32_0 = arith.constant 0 : i32
    return %arg0, %c0_i32 : i32, i32
  }
}

</mosaic_0001>

<bundles_post_ra>
// kernel: tpu_custom_call.1
= control target key start
LH: loop header
LB: loop body
LE: loop exit
PB: predicated region body
PF: predicated region fallthrough
CT: control target
= control target key end

     0   :  { %14 = vsyncpa [#allocation3], 0  ;;  %s1078_s0 = inlined_call_operand.hbm [shape: f32[8,16], index: 0, kind: input, shape index: {}]   ;;  %s1079_s1 = inlined_call_operand.hbm [shape: f32[16,128], index: 1, kind: input, shape index: {}]   ;;  %s1080_s2 = inlined_call_operand.vmem [shape: f32[1,128], index: 2, kind: input, shape index: {}]   ;;  %s1081_s3 = inlined_call_operand.hbm [shape: f32[128,128], index: 3, kind: input, shape index: {}]   ;;  %s1082_s4 = inlined_call_operand.vmem [shape: f32[1,128], index: 4, kind: input, shape index: {}]   ;;  %s1083_s5 = inlined_call_operand.hbm [shape: f32[128,128], index: 5, kind: input, shape index: {}]   ;;  %s1084_s6 = inlined_call_operand.vmem [shape: f32[1,128], index: 6, kind: input, shape index: {}]   ;;  %s1085_s7 = inlined_call_operand.hbm [shape: f32[128,128], index: 7, kind: input, shape index: {}]   ;;  %s1086_s8 = inlined_call_operand.vmem [shape: f32[1,128], index: 8, kind: input, shape index: {}]   ;;  %s1087_s9 = inlined_call_operand.hbm [shape: f32[8,128], index: 9, kind: output, shape index: {}]  }
   0x1   :  { %15 = vsyncpa [#allocation6], 0 }
   0x2   :  { %16 = vsyncpa [#allocation9], 0 }
   0x3   :  { %17 = vsyncpa [#allocation4], 0  ;;  %s888_s30 = smov [#allocation5]   ;;  %s748_s13 = scalar_lea.hbm %s1079_s1, 256 }
   0x4   :  { %s33_s10 = sshll.u32 %s888_s30, 4  ;;  %p749_p0 = scmp.ne.s32.totalorder %s1079_s1, %s748_s13  ;;  %s34_s10 = int_to_ptr.vmem [resolvable:$true] %s33_s10 }
   0x5   :  { %p752_p1 = scmp.lt.u32.totalorder %s748_s13, %s1079_s1 }
   0x7   :  { %p754_p2 = pnand %p752_p1, %p749_p0 }
   0x9   :  { %757 = shalt.err (!%p754_p2)
}
   0xa   :  { %s758_s18 = scalar_lea.vmem %s34_s10, 256  ;;  %p763_p4 = scmp.lt.s32.totalorder %s34_s10, %s34_s10 }
   0xb   :  { %p759_p3 = scmp.ne.s32.totalorder %s34_s10, %s758_s18  ;;  %p764_p5 = scmp.lt.s32.totalorder %s758_s18, %s758_s18 }
   0xd   :  { %p765_p6 = por %p764_p5, %p763_p4 }
   0xf   :  { %p766_p7 = pnand %p765_p6, %p759_p3 }
  0x11   :  { %769 = shalt.err (!%p766_p7)
}
  0x12   :  { %s889_s19 = smov 128   ;;  %s890_s20 = smov 8  }
  0x13   :  { %39 = dma.hbm_to_vmem [thread:$0]  %s1079_s1, 256, %s34_s10, [#allocation6], %s889_s19, %s889_s19, %s890_s20  }
  0x14   :  { %s891_s23 = smov [#allocation8]   ;;  %s892_s25 = smov [#allocation2]  }
  0x15   :  { %s61_s24 = sshll.u32 %s891_s23, 4  ;;  %s24_s26 = sshll.u32 %s892_s25, 4  ;;  %s62_s24 = int_to_ptr.vmem [resolvable:$true] %s61_s24  ;;  %s25_s26 = int_to_ptr.vmem [resolvable:$true] %s24_s26 }
  0x16   :  { %s770_s29 = scalar_lea.hbm %s1083_s5, 2048 }
  0x17   :  { %p771_p8 = scmp.ne.s32.totalorder %s1083_s5, %s770_s29  ;;  %p774_p9 = scmp.lt.u32.totalorder %s770_s29, %s1083_s5 }
  0x19   :  { %p776_p10 = pnand %p774_p9, %p771_p8 }
  0x1b   :  { %779 = shalt.err (!%p776_p10)
}
  0x1c   :  { %s780_s1 = scalar_lea.vmem %s62_s24, 2048  ;;  %p785_p12 = scmp.lt.s32.totalorder %s62_s24, %s62_s24 }
  0x1d   :  { %p781_p11 = scmp.ne.s32.totalorder %s62_s24, %s780_s1  ;;  %p786_p13 = scmp.lt.s32.totalorder %s780_s1, %s780_s1 }
  0x1f   :  { %p787_p0 = por %p786_p13, %p785_p12 }
  0x21   :  { %p788_p1 = pnand %p787_p0, %p781_p11 }
  0x23   :  { %791 = shalt.err (!%p788_p1)
}
  0x24   :  { %67 = dma.hbm_to_vmem [thread:$0]  %s1083_s5, 2048, %s62_s24, [#allocation9], %s889_s19, %s889_s19, %s890_s20  }
  0x25   :  { %s792_s17 = scalar_lea.hbm %s1078_s0, 128 }
  0x26   :  { %p793_p2 = scmp.ne.s32.totalorder %s1078_s0, %s792_s17  ;;  %p796_p3 = scmp.lt.u32.totalorder %s792_s17, %s1078_s0 }
  0x28   :  { %p798_p4 = pnand %p796_p3, %p793_p2 }
  0x2a   :  { %801 = shalt.err (!%p798_p4)
}
  0x2b   :  { %s802_s25 = scalar_lea.vmem %s25_s26, 128  ;;  %p807_p6 = scmp.lt.s32.totalorder %s25_s26, %s25_s26 }
  0x2c   :  { %p803_p5 = scmp.ne.s32.totalorder %s25_s26, %s802_s25  ;;  %p808_p7 = scmp.lt.s32.totalorder %s802_s25, %s802_s25 }
  0x2e   :  { %p809_p8 = por %p808_p7, %p807_p6 }
  0x30   :  { %p810_p9 = pnand %p809_p8, %p803_p5 }
  0x32   :  { %813 = shalt.err (!%p810_p9)
}
  0x33   :  { %27 = dma.hbm_to_vmem [thread:$0]  %s1078_s0, 128, %s25_s26, [#allocation3]  }
  0x34   :  { %s893_s27 = smov [#allocation7]   ;;  %s894_s29 = smov [#allocation10]  }
  0x35   :  { %s47_s28 = sshll.u32 %s893_s27, 4  ;;  %s75_s30 = sshll.u32 %s894_s29, 4  ;;  %s48_s28 = int_to_ptr.vmem [resolvable:$true] %s47_s28  ;;  %s76_s30 = int_to_ptr.vmem [resolvable:$true] %s75_s30 }
  0x36   :  { %s814_s13 = scalar_lea.hbm %s1081_s3, 2048 }
  0x37   :  { %p815_p10 = scmp.ne.s32.totalorder %s1081_s3, %s814_s13  ;;  %p818_p11 = scmp.lt.u32.totalorder %s814_s13, %s1081_s3 }
  0x39   :  { %p820_p12 = pnand %p818_p11, %p815_p10 }
  0x3b   :  { %823 = shalt.err (!%p820_p12)
}
  0x3c   :  { %s824_s0 = scalar_lea.vmem %s48_s28, 2048  ;;  %p829_p0 = scmp.lt.s32.totalorder %s48_s28, %s48_s28 }
  0x3d   :  { %p825_p13 = scmp.ne.s32.totalorder %s48_s28, %s824_s0  ;;  %p830_p1 = scmp.lt.s32.totalorder %s824_s0, %s824_s0 }
  0x3f   :  { %p831_p2 = por %p830_p1, %p829_p0 }
  0x41   :  { %p832_p3 = pnand %p831_p2, %p825_p13 }
  0x43   :  { %835 = shalt.err (!%p832_p3)
}
  0x44   :  { %53 = dma.hbm_to_vmem [thread:$0]  %s1081_s3, 2048, %s48_s28, [#allocation6], %s889_s19, %s889_s19, %s890_s20  }
  0x45   :  { %s836_s21 = scalar_lea.hbm %s1085_s7, 2048 }
  0x46   :  { %p837_p4 = scmp.ne.s32.totalorder %s1085_s7, %s836_s21  ;;  %p840_p5 = scmp.lt.u32.totalorder %s836_s21, %s1085_s7 }
  0x48   :  { %p842_p6 = pnand %p840_p5, %p837_p4 }
  0x4a   :  { %845 = shalt.err (!%p842_p6)
}
  0x4b   :  { %s846_s24 = scalar_lea.vmem %s76_s30, 2048  ;;  %p851_p8 = scmp.lt.s32.totalorder %s76_s30, %s76_s30 }
  0x4c   :  { %p847_p7 = scmp.ne.s32.totalorder %s76_s30, %s846_s24  ;;  %p852_p9 = scmp.lt.s32.totalorder %s846_s24, %s846_s24 }
  0x4e   :  { %p853_p10 = por %p852_p9, %p851_p8 }
  0x50   :  { %p854_p11 = pnand %p853_p10, %p847_p7 }
  0x52   :  { %857 = shalt.err (!%p854_p11)
}
  0x53   :  { %81 = dma.hbm_to_vmem [thread:$0]  %s1085_s7, 2048, %s76_s30, [#allocation9], %s889_s19, %s889_s19, %s890_s20  }
  0x54   :  { %880 = dma.done.wait [#allocation3], 128  }
  0x55   :  { %881 = vsyncadd [#allocation3], 4294967168 }
  0x56   :  { %882 = dma.done.wait [#allocation6], 2304  }
  0x57   :  { %883 = vsyncadd [#allocation6], 4294964992 }
  0x58   :  { %884 = dma.done.wait [#allocation9], 4096  }
  0x59   :  { %885 = vsyncadd [#allocation9], 4294963200  ;;  %v895_v0 = vmov 0.0|0.0   ;;  %vm896_vm0 = vmmov 0   ;;  %v897_v1 = vmov 0.0   ;;  %v100_v2 = vld [vmem:[#allocation5] sm:$0xff] }
  0x5a   :  { %660 = vmatprep.subr.bf16.mxu0 %v895_v0  ;;  %552 = vmatprep.mubr.msk.f32.mxu0 %vm896_vm0, %v897_v1  ;;  %v101_v3 = vld [vmem:[#allocation5 + $0x8] sm:$0xff]  ;;  %v184_v5 = vld [vmem:[#allocation7] sm:$0xff]  ;;  %v185_v6 = vld [vmem:[#allocation7 + $0x8] sm:$0xff]  ;;  %vm109_vm1 = vcmask 130048   ;;  %s898_s11 = smov [#allocation11]  }
  0x5b   :  { %663 = vmatprep.subr.bf16.mxu1 %v895_v0  ;;  %587 = vmatprep.mubr.msk.f32.mxu1 %vm896_vm0, %v897_v1  ;;  %v661_v4 = vpack.c.bf16 %v101_v3, %v100_v2  ;;  %v186_v7 = vld [vmem:[#allocation7 + $0x10] sm:$0xff]  ;;  %v664_v8 = vpack.c.bf16 %v185_v6, %v184_v5  ;;  %v187_v9 = vld [vmem:[#allocation7 + $0x18] sm:$0xff]  ;;  %v99_v10 = vld [vmem:[#allocation2] sm:$0xff]  ;;  %s478_s12 = sshll.u32 %s898_s11, 4  ;;  %s479_s12 = int_to_ptr.vmem [resolvable:$true] %s478_s12 }
  0x5c   :  { %v667_v11 = vpack.c.bf16 %v187_v9, %v186_v7  ;;  %v188_v12 = vld [vmem:[#allocation7 + $0x20] sm:$0xff]  ;;  %v189_v13 = vld [vmem:[#allocation7 + $0x28] sm:$0xff]  ;;  %v190_v15 = vld [vmem:[#allocation7 + $0x30] sm:$0xff]  ;;  %p863_p13 = scmp.lt.s32.totalorder %s479_s12, %s479_s12 }
  0x5d   :  { %662 = vmatpush3.bf16.msra.mxu0 %v661_v4  ;;  %665 = vmatpush3.bf16.msra.mxu1 %v664_v8  ;;  %v670_v14 = vpack.c.bf16 %v189_v13, %v188_v12  ;;  %v191_v16 = vld [vmem:[#allocation7 + $0x38] sm:$0xff]  ;;  %v192_v18 = vld [vmem:[#allocation7 + $0x40] sm:$0xff]  ;;  %v193_v19 = vld [vmem:[#allocation7 + $0x48] sm:$0xff] }
  0x5e   :  { %687 = vmatprep.subr.bf16.mxu0 %v895_v0  ;;  %666 = vmatprep.subr.bf16.mxu1 %v895_v0  ;;  %v673_v17 = vpack.c.bf16 %v191_v16, %v190_v15  ;;  %v676_v20 = vpack.c.bf16 %v193_v19, %v192_v18  ;;  %v194_v21 = vld [vmem:[#allocation7 + $0x50] sm:$0xff]  ;;  %v195_v22 = vld [vmem:[#allocation7 + $0x58] sm:$0xff]  ;;  %v196_v24 = vld [vmem:[#allocation7 + $0x60] sm:$0xff] }
  0x5f   :  { %v679_v23 = vpack.c.bf16 %v195_v22, %v194_v21  ;;  %v197_v25 = vld [vmem:[#allocation7 + $0x68] sm:$0xff]  ;;  %v198_v27 = vld [vmem:[#allocation7 + $0x70] sm:$0xff]  ;;  %v199_v28 = vld [vmem:[#allocation7 + $0x78] sm:$0xff] }
  0x60   :  { %553 = vmatmul.mubr.msk.f32.vlgmr.msra.gmra.mrb[0].mxu0 %vm109_vm1, %v99_v10  ;;  %v682_v26 = vpack.c.bf16 %v197_v25, %v196_v24  ;;  %v685_v29 = vpack.c.bf16 %v199_v28, %v198_v27  ;;  %v278_v30 = vld [vmem:[#allocation8] sm:$0xff]  ;;  %v279_v31 = vld [vmem:[#allocation8 + $0x8] sm:$0xff]  ;;  %v280_v32 = vld [vmem:[#allocation8 + $0x10] sm:$0xff] }
  0x61   :  { %622 = vmatprep.mubr.msk.f32.mxu0 %vm896_vm0, %v897_v1  ;;  %668 = vmatpush3.bf16.msra.mxu1 %v667_v11  ;;  %v688_v33 = vpack.c.bf16 %v279_v31, %v278_v30  ;;  %v281_v34 = vld [vmem:[#allocation8 + $0x18] sm:$0xff]  ;;  %v282_v36 = vld [vmem:[#allocation8 + $0x20] sm:$0xff]  ;;  %v283_v37 = vld [vmem:[#allocation8 + $0x28] sm:$0xff] }
  0x62   :  { %669 = vmatprep.subr.bf16.mxu1 %v895_v0  ;;  %v691_v35 = vpack.c.bf16 %v281_v34, %v280_v32  ;;  %v694_v38 = vpack.c.bf16 %v283_v37, %v282_v36  ;;  %v284_v39 = vld [vmem:[#allocation8 + $0x30] sm:$0xff]  ;;  %v285_v40 = vld [vmem:[#allocation8 + $0x38] sm:$0xff]  ;;  %v286_v42 = vld [vmem:[#allocation8 + $0x40] sm:$0xff]  ;;  %v465_v34 = vlaneseq }
  0x63   :  { %689 = vmatpush3.bf16.msra.mxu0 %v688_v33  ;;  %v697_v41 = vpack.c.bf16 %v285_v40, %v284_v39  ;;  %v287_v43 = vld [vmem:[#allocation8 + $0x48] sm:$0xff]  ;;  %v288_v45 = vld [vmem:[#allocation8 + $0x50] sm:$0xff]  ;;  %v289_v46 = vld [vmem:[#allocation8 + $0x58] sm:$0xff] }
  0x64   :  { %690 = vmatprep.subr.bf16.mxu0 %v895_v0  ;;  %v700_v44 = vpack.c.bf16 %v287_v43, %v286_v42  ;;  %v703_v47 = vpack.c.bf16 %v289_v46, %v288_v45  ;;  %v290_v48 = vld [vmem:[#allocation8 + $0x60] sm:$0xff]  ;;  %v291_v49 = vld [vmem:[#allocation8 + $0x68] sm:$0xff]  ;;  %v292_v56 = vld [vmem:[#allocation8 + $0x70] sm:$0xff] }
  0x65   :  { %671 = vmatpush3.bf16.msra.mxu1 %v670_v14  ;;  %v706_v50 = vpack.c.bf16 %v291_v49, %v290_v48  ;;  %v489_v51 = vld [vmem:[%s1080_s2] ss:$0 sm:$0xff]  ;;  %v293_v57 = vld [vmem:[#allocation8 + $0x78] sm:$0xff]  ;;  %v372_v59 = vld [vmem:[#allocation10] sm:$0xff] }
  0x66   :  { %672 = vmatprep.subr.bf16.mxu1 %v895_v0  ;;  %v709_v58 = vpack.c.bf16 %v293_v57, %v292_v56  ;;  %v373_v60 = vld [vmem:[#allocation10 + $0x8] sm:$0xff]  ;;  %v374_v61 = vld [vmem:[#allocation10 + $0x10] sm:$0xff]  ;;  %v375_v63 = vld [vmem:[#allocation10 + $0x18] sm:$0xff] }
  0x67   :  { %692 = vmatpush3.bf16.msra.mxu0 %v691_v35  ;;  %v712_v62 = vpack.c.bf16 %v373_v60, %v372_v59  ;;  %v715_v2 = vpack.c.bf16 %v375_v63, %v374_v61  ;;  %v376_v3 = vld [vmem:[#allocation10 + $0x20] sm:$0xff]  ;;  %v377_v4 = vld [vmem:[#allocation10 + $0x28] sm:$0xff]  ;;  %v379_v6 = vld [vmem:[#allocation10 + $0x38] sm:$0xff]  ;;  %v466_v35 = vand.u32 127, %v465_v34 }
  0x68   :  { %693 = vmatprep.subr.bf16.mxu0 %v895_v0  ;;  %v718_v5 = vpack.c.bf16 %v377_v4, %v376_v3  ;;  %v380_v8 = vld [vmem:[#allocation10 + $0x40] sm:$0xff]  ;;  %v381_v9 = vld [vmem:[#allocation10 + $0x48] sm:$0xff]  ;;  %v382_v11 = vld [vmem:[#allocation10 + $0x50] sm:$0xff] }
  0x69   :  { %674 = vmatpush3.bf16.msra.mxu1 %v673_v17  ;;  %v724_v10 = vpack.c.bf16 %v381_v9, %v380_v8  ;;  %v383_v12 = vld [vmem:[#allocation10 + $0x58] sm:$0xff]  ;;  %v384_v14 = vld [vmem:[#allocation10 + $0x60] sm:$0xff]  ;;  %v385_v15 = vld [vmem:[#allocation10 + $0x68] sm:$0xff]  ;;  %vm467_vm2 = vcmp.ge.s32.totalorder %v466_v35, 8 }
  0x6a   :  { %675 = vmatprep.subr.bf16.mxu1 %v895_v0  ;;  %v727_v13 = vpack.c.bf16 %v383_v12, %v382_v11  ;;  %v730_v16 = vpack.c.bf16 %v385_v15, %v384_v14  ;;  %v491_v17 = vld [vmem:[%s1082_s4] ss:$0 sm:$0xff]  ;;  %v386_v22 = vld [vmem:[#allocation10 + $0x70] sm:$0xff] }
  0x6b   :  { %695 = vmatpush3.bf16.msra.mxu0 %v694_v38  ;;  %v492_v25 = vld [vmem:[%s1084_s6] ss:$0 sm:$0xff]  ;;  %s858_s6 = scalar_lea.vmem %s479_s12, 128 }
  0x6c   :  { %696 = vmatprep.subr.bf16.mxu0 %v895_v0  ;;  %p859_p12 = scmp.ne.s32.totalorder %s479_s12, %s858_s6  ;;  %p864_p0 = scmp.lt.s32.totalorder %s858_s6, %s858_s6 }
  0x6d   :  { %677 = vmatpush3.bf16.msra.mxu1 %v676_v20 }
  0x6e   :  { %678 = vmatprep.subr.bf16.mxu1 %v895_v0  ;;  %p865_p1 = por %p864_p0, %p863_p13 }
  0x6f   :  { %698 = vmatpush3.bf16.msra.mxu0 %v697_v41 }
  0x70   :  { %699 = vmatprep.subr.bf16.mxu0 %v895_v0  ;;  %p866_p2 = pnand %p865_p1, %p859_p12 }
  0x71   :  { %680 = vmatpush3.bf16.msra.mxu1 %v679_v23  ;;  %v387_v23 = vld [vmem:[#allocation10 + $0x78] sm:$0xff] }
  0x72   :  { %681 = vmatprep.subr.bf16.mxu1 %v895_v0  ;;  %v733_v24 = vpack.c.bf16 %v387_v23, %v386_v22 }
  0x73   :  { %701 = vmatpush3.bf16.msra.mxu0 %v700_v44 }
  0x74   :  { %702 = vmatprep.subr.bf16.mxu0 %v895_v0 }
  0x75   :  { %683 = vmatpush3.bf16.msra.mxu1 %v682_v26 }
  0x76   :  { %684 = vmatprep.subr.bf16.mxu1 %v895_v0 }
  0x77   :  { %704 = vmatpush3.bf16.msra.mxu0 %v703_v47 }
  0x78   :  { %705 = vmatprep.subr.bf16.mxu0 %v895_v0 }
  0x79   :  { %686 = vmatpush3.bf16.msra.mxu1 %v685_v29  ;;  %v493_v29 = vld [vmem:[%s1086_s8] ss:$0 sm:$0xff] }
  0x7a   :  { %711 = vmatprep.subr.bf16.mxu1 %v895_v0 }
  0x7b   :  { %707 = vmatpush3.bf16.msra.mxu0 %v706_v50 }
  0x7c   :  { %708 = vmatprep.subr.bf16.mxu0 %v895_v0 }
  0x7f   :  { %710 = vmatpush3.bf16.msra.mxu0 %v709_v58 }
 0x133   :  { %v179_v52 = vpop.f32.mrb[0].mxu0 }
 0x134   :  { %v180_v53 = vadd.f32 %v489_v51, %v179_v52  ;;  %v554_v54 = vpop.f32.mrb[1].mxu0 }
 0x136   :  { %v183_v55 = vmax.f32 %v180_v53, 0.0 }
 0x138   :  { %588 = vmatmul.mubr.f32.vlgmr.msra.gmra.mrb[0].mxu1 %v183_v55 }
 0x139   :  { %657 = vmatprep.mubr.msk.f32.mxu1 %vm896_vm0, %v897_v1  ;;  %713 = vmatpush3.bf16.msra.mxu1 %v712_v62  ;;  %v378_v1 = vld [vmem:[#allocation10 + $0x30] sm:$0xff] }
 0x13a   :  { %714 = vmatprep.subr.bf16.mxu1 %v895_v0  ;;  %v721_v7 = vpack.c.bf16 %v379_v6, %v378_v1 }
 0x13d   :  { %716 = vmatpush3.bf16.msra.mxu1 %v715_v2 }
 0x13e   :  { %717 = vmatprep.subr.bf16.mxu1 %v895_v0 }
 0x141   :  { %719 = vmatpush3.bf16.msra.mxu1 %v718_v5 }
 0x142   :  { %720 = vmatprep.subr.bf16.mxu1 %v895_v0 }
 0x145   :  { %722 = vmatpush3.bf16.msra.mxu1 %v721_v7 }
 0x146   :  { %723 = vmatprep.subr.bf16.mxu1 %v895_v0 }
 0x149   :  { %725 = vmatpush3.bf16.msra.mxu1 %v724_v10 }
 0x14a   :  { %726 = vmatprep.subr.bf16.mxu1 %v895_v0 }
 0x14d   :  { %728 = vmatpush3.bf16.msra.mxu1 %v727_v13 }
 0x14e   :  { %729 = vmatprep.subr.bf16.mxu1 %v895_v0 }
 0x151   :  { %731 = vmatpush3.bf16.msra.mxu1 %v730_v16 }
 0x152   :  { %732 = vmatprep.subr.bf16.mxu1 %v895_v0 }
 0x155   :  { %734 = vmatpush3.bf16.msra.mxu1 %v733_v24 }
 0x20b   :  { %v273_v18 = vpop.f32.mrb[0].mxu1 }
 0x20c   :  { %v274_v19 = vadd.f32 %v491_v17, %v273_v18  ;;  %v589_v20 = vpop.f32.mrb[1].mxu1 }
 0x20e   :  { %v277_v21 = vmax.f32 %v274_v19, 0.0 }
 0x210   :  { %623 = vmatmul.mubr.f32.vlgmr.msra.gmra.mrb[2].mxu0 %v277_v21 }
 0x2e3   :  { %v367_v26 = vpop.f32.mrb[2].mxu0 }
 0x2e4   :  { %v368_v27 = vadd.f32 %v492_v25, %v367_v26  ;;  %v624_v0 = vpop.f32.mrb[3].mxu0 }
 0x2e6   :  { %v371_v28 = vmax.f32 %v368_v27, 0.0 }
 0x2e8   :  { %658 = vmatmul.mubr.f32.vlgmr.msra.gmra.mrb[2].mxu1 %v371_v28 }
 0x3bb   :  { %v461_v30 = vpop.f32.mrb[2].mxu1 }
 0x3bc   :  { %v462_v31 = vadd.f32 %v493_v29, %v461_v30  ;;  %v659_v32 = vpop.f32.mrb[3].mxu1 }
 0x3be   :  { %v468_v33 = vmul.f32 1.442695, %v462_v31 }
 0x3c0   :  { %746 = vpow2.f32 %v468_v33 }
 0x3ca   :  { %v747_v36 = vpop.eup %746 }
 0x3cb   :  { %v470_v37 = vsel %vm467_vm2, %v747_v36, %v462_v31 }
 0x3cc   :  { %471 = vst [vmem:[#allocation11] sm:$0xff] %v470_v37 }
 0x3cd   :  { %869 = shalt.err (!%p866_p2)
}
 0x3ce   :  { %s870_s1 = scalar_lea.hbm %s1087_s9, 128 }
 0x3cf   :  { %p871_p3 = scmp.ne.s32.totalorder %s1087_s9, %s870_s1  ;;  %p874_p4 = scmp.lt.u32.totalorder %s870_s1, %s1087_s9 }
 0x3d1   :  { %p876_p5 = pnand %p874_p4, %p871_p3 }
 0x3d3   :  { %879 = shalt.err (!%p876_p5)
}
 0x3d4   :  { %481 = dma.vmem_to_hbm [thread:$0]  %s479_s12, 128, %s1087_s9, [#allocation4]  }
 0x3d5   :  { %886 = dma.done.wait [#allocation4], 128  }
 0x3d6   :  { %887 = vsyncadd [#allocation4], 4294967168 }
 0x3d7   :  { %485 = vsyncpa [#allocation3], 1 }
 0x3d8   :  { %486 = vsyncpa [#allocation6], 1 }
 0x3d9   :  { %487 = vsyncpa [#allocation9], 1 }
 0x3da   :  { %488 = vsyncpa [#allocation4], 1 }

</bundles_post_ra>
